<compile_context>
chip_gen: v5e
topology: v5e:2x2
jax: 0.10.0
libtpu: 0.0.40
codegen_flags: <defaults>
</compile_context>

<pallas_src>
import functools

import jax
import jax.numpy as jnp
from jax import lax
from jax.experimental import pallas as pl
from jax.experimental.pallas import tpu as pltpu


def _round_up(v, m):
    return ((v + m - 1) // m) * m


def _gcn_scale_kernel(*refs, xw_first, residual):
    """One (row_tile, k_tile) grid step of the normalized aggregation.

    out_i = ReLU( d_i * sum_k Ahat[i,k] @ fs[k]   [@ W]  + b  [+ x_i] )
    with fs = d * feat (bf16, precomputed) and Ahat = A + I (int8 in HBM).
    """
    a_ref, fs_ref, d_ref, b_ref = refs[:4]
    pos = 4
    w_ref = None
    x_ref = None
    if not xw_first:
        w_ref = refs[pos]
        pos += 1
    if residual:
        x_ref = refs[pos]
        pos += 1
    o_ref, acc_ref = refs[pos], refs[pos + 1]

    k = pl.program_id(1)

    @pl.when(k == 0)
    def _init():
        acc_ref[...] = jnp.zeros_like(acc_ref)

    # int8 {0,1,2} adjacency tile -> bf16 (exact); MXU matmul with f32 accum.
    a = a_ref[...].astype(jnp.bfloat16)                          # (tm, tk)
    acc_ref[...] += jnp.dot(a, fs_ref[...],
                            preferred_element_type=jnp.float32)  # (tm, Cf) f32

    @pl.when(k == pl.num_programs(1) - 1)
    def _finalize():
        agg = d_ref[...] * acc_ref[...]                          # row-scale by d_i
        if xw_first:
            h = agg + b_ref[...]
        else:
            h = jnp.dot(agg.astype(jnp.bfloat16), w_ref[...],
                        preferred_element_type=jnp.float32) + b_ref[...]
        if residual:
            h = h + x_ref[...]
        # dropout == 0.0 in this config -> identity; ReLU nonlinearity.
        o_ref[...] = jnp.maximum(h, 0.0).astype(o_ref.dtype)


def gcn_conv_scale(adj, x, w, b, *, residual=False):
    """One GCNConvLayer forward for a single scale.

    adj : (n, n) {0,1} f32 adjacency (no self loops required; +I is added here)
    x   : (n, c_in)  f32 node features
    w   : (c_in, c_out) f32,   b : (1, c_out) or (c_out,) f32
    Returns (n, c_out) f32.
    """
    n, c_in = x.shape
    c_out = w.shape[1]
    c_in_pad = _round_up(c_in, 128)
    c_out_pad = _round_up(c_out, 128)
    # The MXU / DMA see padded widths, so decide the aggregation width on them.
    xw_first = c_out_pad < c_in_pad

    # Tile size: fills the MXU, int8 tiles double-buffer comfortably in VMEM.
    if n <= 128:
        n_pad, t = 128, 128
    else:
        t = 256
        n_pad = _round_up(n, t)
    pad_n = n_pad - n

    # A_hat = A + I as int8 in HBM.  Padded rows get a lone self-loop so their
    # degree is 1 (rsqrt stays finite); padded rows/cols are sliced away below.
    a_i8 = jnp.pad(adj, ((0, pad_n), (0, pad_n))).astype(jnp.int8)
    diag = jnp.arange(n_pad)
    a_i8 = a_i8.at[diag, diag].add(jnp.int8(1))
    # TODO(synk): int8 storage assumes a {0,1} adjacency; weighted adjacencies
    # would need bf16 storage of A_hat instead.

    # D^{-1/2} of (A + I): computed once in XLA (f32), passed as (N, 1).
    deg = jnp.sum(a_i8.astype(jnp.float32), axis=1, keepdims=True)
    inv_sqrt_deg = lax.rsqrt(deg)                                 # (n_pad, 1)

    if xw_first:
        # Shrink feature width before the N x N aggregation (small XLA matmul).
        feat = jnp.pad(jnp.dot(x, w),
                       ((0, pad_n), (0, c_out_pad - c_out)))
        cf_pad = c_out_pad
    else:
        feat = jnp.pad(x, ((0, pad_n), (0, c_in_pad - c_in)))
        cf_pad = c_in_pad
    fs = (inv_sqrt_deg * feat).astype(jnp.bfloat16)               # (n_pad, cf_pad)

    b_pad = jnp.pad(jnp.asarray(b, jnp.float32).reshape(1, -1),
                    ((0, 0), (0, c_out_pad - c_out)))

    operands = [a_i8, fs, inv_sqrt_deg, b_pad]
    in_specs = [
        pl.BlockSpec((t, t), lambda i, k: (i, k)),                # A_hat tile (int8)
        pl.BlockSpec((t, cf_pad), lambda i, k: (k, 0)),           # fs k-rows (bf16)
        pl.BlockSpec((t, 1), lambda i, k: (i, 0)),                # d row block (f32)
        pl.BlockSpec((1, c_out_pad), lambda i, k: (0, 0)),        # bias (f32)
    ]
    if not xw_first:
        w_bf16 = jnp.pad(w.astype(jnp.bfloat16),
                         ((0, c_in_pad - c_in), (0, c_out_pad - c_out)))
        operands.append(w_bf16)
        in_specs.append(pl.BlockSpec((c_in_pad, c_out_pad), lambda i, k: (0, 0)))
    if residual:
        # residual requires c_in == c_out (as in the torch layer).
        x_res = jnp.pad(x.astype(jnp.float32),
                        ((0, pad_n), (0, c_out_pad - c_in)))
        operands.append(x_res)
        in_specs.append(pl.BlockSpec((t, c_out_pad), lambda i, k: (i, 0)))

    grid = (n_pad // t, n_pad // t)

    # Per-step VMEM: double-buffered I/O blocks + resident f32 accumulator.
    blk_bytes = (t * t                                           # int8 A tile
                 + 2 * t * cf_pad                                 # bf16 fs tile
                 + 4 * t + 4 * c_out_pad                          # d + bias
                 + (0 if xw_first else 2 * c_in_pad * c_out_pad)  # bf16 W
                 + (4 * t * c_out_pad if residual else 0)         # f32 x_res
                 + 4 * t * c_out_pad)                             # f32 out block
    vmem_limit = int(min(max(2 * blk_bytes + 4 * t * cf_pad + (4 << 20),
                             16 << 20), 40 << 20))

    out = pl.pallas_call(
        functools.partial(_gcn_scale_kernel,
                          xw_first=xw_first, residual=residual),
        out_shape=jax.ShapeDtypeStruct((n_pad, c_out_pad), jnp.float32),
        grid=grid,
        in_specs=in_specs,
        out_specs=pl.BlockSpec((t, c_out_pad), lambda i, k: (i, 0)),
        scratch_shapes=[pltpu.VMEM((t, cf_pad), jnp.float32)],
        compiler_params=pltpu.CompilerParams(
            dimension_semantics=("parallel", "arbitrary"),
            vmem_limit_bytes=vmem_limit),
    )(*operands)

    return out[:n, :c_out]


class MultiscaleGraphConvLayer:
    """JAX/Pallas port of models/immpnn.MultiscaleGraphConvLayer ('gcnconv')."""

    def __init__(self, in_channels, out_channels, scales, conv_type="gcnconv",
                 dropout=0.0, residual=False, key=None):
        if conv_type != "gcnconv":
            # TODO(synk): 'gatedgcnconv' / 'gineconv' need edge features/gating;
            # only GCNConv is ported.
            raise ValueError("Model {} unavailable".format(conv_type))
        self.in_channels = in_channels
        self.out_channels = out_channels
        self.scales = scales
        self.dropout = dropout          # 0.0 -> identity at inference
        self.residual = residual
        if key is None:
            key = jax.random.PRNGKey(0)
        keys = jax.random.split(key, scales + 1)
        lim = 1.0 / (in_channels ** 0.5)
        self.params = []
        for k in keys:
            w = jax.random.uniform(k, (in_channels, out_channels),
                                   jnp.float32, minval=-lim, maxval=lim)
            b = jnp.zeros((1, out_channels), jnp.float32)
            self.params.append((w, b))

    def __call__(self, batches_in_scales):
        assert len(batches_in_scales) == self.scales + 1, (
            "Number of scales should be equal to the number of batches in scales + 1")
        out = []
        for (adj, x), (w, b) in zip(batches_in_scales, self.params):
            y = gcn_conv_scale(adj, x, w, b, residual=self.residual)
            out.append((adj, y))
        return out


def _make_graph(key, n, c):
    k_adj, k_x = jax.random.split(key)
    a = (jax.random.uniform(k_adj, (n, n)) < 0.3).astype(jnp.float32)
    a = jnp.maximum(a, a.T)                                    # symmetric
    eye = jnp.eye(n, dtype=jnp.float32)
    a = a * (1.0 - eye)                                        # kernel adds self loops
    x = jax.random.normal(k_x, (n, c), dtype=jnp.float32)
    return a, x


def _gcn_reference(adj, x, w, b, residual):
    """Pure-JAX f32 reference for one scale (matches the torch GCNConvLayer)."""
    n = adj.shape[0]
    a_hat = adj.astype(jnp.float32) + jnp.eye(n, dtype=jnp.float32)
    d = jnp.sum(a_hat, axis=1, keepdims=True)
    a_norm = a_hat * lax.rsqrt(d) * lax.rsqrt(d.T)
    h = a_norm @ x @ w + b
    if residual:
        h = h + x
    return jnp.maximum(h, 0.0)


if __name__ == "__main__":
    key = jax.random.PRNGKey(0)
    in_channels, out_channels, scales = 8, 8, 2
    node_counts = [16, 12, 8]                                  # one graph per scale

    k_layer, *k_graphs = jax.random.split(key, scales + 2)
    layer = MultiscaleGraphConvLayer(in_channels, out_channels, scales,
                                     conv_type="gcnconv", dropout=0.0,
                                     residual=False, key=k_layer)

    batches_in_scales = [_make_graph(kg, n, in_channels)
                         for kg, n in zip(k_graphs, node_counts)]

    out = layer(batches_in_scales)
    for (adj, y), (w, b), (_, x) in zip(out, layer.params, batches_in_scales):
        jax.block_until_ready(y)
        assert y.shape == (adj.shape[0], out_channels)
        assert bool(jnp.all(jnp.isfinite(y)))
        ref = _gcn_reference(adj, x, w, b, residual=False)
        assert bool(jnp.allclose(y, ref, rtol=5e-2, atol=5e-2)), (
            "kernel output deviates from f32 reference")

    print("KERNEL_OK")
</pallas_src>

<mosaic_0001>
module attributes {stable_mosaic.version = 11 : i64} {
  func.func @_gcn_scale_kernel(%arg0: i32, %arg1: i32, %arg2: memref<128x128xi8, #tpu.memory_space<vmem>>, %arg3: memref<128x128xbf16, #tpu.memory_space<vmem>>, %arg4: memref<128x1xf32, #tpu.memory_space<vmem>>, %arg5: memref<1x128xf32, #tpu.memory_space<vmem>>, %arg6: memref<128x128xbf16, #tpu.memory_space<vmem>>, %arg7: memref<128x128xf32, #tpu.memory_space<vmem>>, %arg8: memref<128x128xf32, #tpu.memory_space<vmem>>) attributes {dimension_semantics = [#tpu.dimension_semantics<parallel>, #tpu.dimension_semantics<arbitrary>], iteration_bounds = array<i64: 1, 1>, scalar_prefetch = 0 : i64, scratch_operands = 1 : i64, tpu.core_type = #tpu.core_type<tc>, window_params = [{transform_indices = @transform_0, window_bounds = array<i64: 128, 128>}, {transform_indices = @transform_1, window_bounds = array<i64: 128, 128>}, {transform_indices = @transform_2, window_bounds = array<i64: 128, 1>}, {pipeline_mode = #tpu.pipeline_mode<synchronous>, transform_indices = @transform_3, window_bounds = array<i64: 1, 128>}, {pipeline_mode = #tpu.pipeline_mode<synchronous>, transform_indices = @transform_4, window_bounds = array<i64: 128, 128>}, {transform_indices = @transform_5, window_bounds = array<i64: 128, 128>}]} {
    %c0_i32 = arith.constant 0 : i32
    %0 = arith.cmpi eq, %arg1, %c0_i32 : i32
    %1 = arith.extui %0 : i1 to i32
    %c0_i32_0 = arith.constant 0 : i32
    %2 = arith.cmpi ne, %1, %c0_i32_0 : i32
    scf.if %2 {
      %cst_10 = arith.constant 0.000000e+00 : f32
      %13 = vector.broadcast %cst_10 : f32 to vector<128x128xf32>
      %c0_11 = arith.constant 0 : index
      %c0_12 = arith.constant 0 : index
      %14 = vector.load %arg8[%c0_11, %c0_12] : memref<128x128xf32, #tpu.memory_space<vmem>>, vector<128x128xf32>
      tpu.vector_store %arg8[%c0_11, %c0_12], %13 {strides = array<i32>} : memref<128x128xf32, #tpu.memory_space<vmem>>, vector<128x128xf32>,
    } else {
    }
    %c0 = arith.constant 0 : index
    %c0_1 = arith.constant 0 : index
    %3 = vector.load %arg2[%c0, %c0_1] : memref<128x128xi8, #tpu.memory_space<vmem>>, vector<128x128xi8>
    %4 = arith.sitofp %3 : vector<128x128xi8> to vector<128x128xbf16>
    %c0_2 = arith.constant 0 : index
    %c0_3 = arith.constant 0 : index
    %5 = vector.load %arg8[%c0_2, %c0_3] : memref<128x128xf32, #tpu.memory_space<vmem>>, vector<128x128xf32>
    %c0_4 = arith.constant 0 : index
    %c0_5 = arith.constant 0 : index
    %6 = vector.load %arg3[%c0_4, %c0_5] : memref<128x128xbf16, #tpu.memory_space<vmem>>, vector<128x128xbf16>
    %cst = arith.constant dense<0.000000e+00> : vector<128x128xf32>
    %7 = tpu.matmul %4, %6, %cst {dimension_numbers = #tpu.dot_dimension_numbers<[1], [0], [0], [1], [0, 0, 1, 1], [], []>} : vector<128x128xbf16>, vector<128x128xbf16>, vector<128x128xf32> -> vector<128x128xf32>
    %8 = arith.addf %5, %7 : vector<128x128xf32>
    %c0_6 = arith.constant 0 : index
    %c0_7 = arith.constant 0 : index
    %9 = vector.load %arg8[%c0_6, %c0_7] : memref<128x128xf32, #tpu.memory_space<vmem>>, vector<128x128xf32>
    tpu.vector_store %arg8[%c0_6, %c0_7], %8 {strides = array<i32>} : memref<128x128xf32, #tpu.memory_space<vmem>>, vector<128x128xf32>,
    %c0_i32_8 = arith.constant 0 : i32
    %10 = arith.cmpi eq, %arg1, %c0_i32_8 : i32
    %11 = arith.extui %10 : i1 to i32
    %c0_i32_9 = arith.constant 0 : i32
    %12 = arith.cmpi ne, %11, %c0_i32_9 : i32
    scf.if %12 {
      %c0_10 = arith.constant 0 : index
      %c0_11 = arith.constant 0 : index
      %13 = vector.load %arg4[%c0_10, %c0_11] : memref<128x1xf32, #tpu.memory_space<vmem>>, vector<128x1xf32>
      %c0_12 = arith.constant 0 : index
      %c0_13 = arith.constant 0 : index
      %14 = vector.load %arg8[%c0_12, %c0_13] : memref<128x128xf32, #tpu.memory_space<vmem>>, vector<128x128xf32>
      %15 = vector.broadcast %13 : vector<128x1xf32> to vector<128x128xf32>
      %16 = arith.mulf %15, %14 : vector<128x128xf32>
      %17 = arith.truncf %16 : vector<128x128xf32> to vector<128x128xbf16>
      %c0_14 = arith.constant 0 : index
      %c0_15 = arith.constant 0 : index
      %18 = vector.load %arg6[%c0_14, %c0_15] : memref<128x128xbf16, #tpu.memory_space<vmem>>, vector<128x128xbf16>
      %cst_16 = arith.constant dense<0.000000e+00> : vector<128x128xf32>
      %19 = tpu.matmul %17, %18, %cst_16 {dimension_numbers = #tpu.dot_dimension_numbers<[1], [0], [0], [1], [0, 0, 1, 1], [], []>} : vector<128x128xbf16>, vector<128x128xbf16>, vector<128x128xf32> -> vector<128x128xf32>
      %c0_17 = arith.constant 0 : index
      %c0_18 = arith.constant 0 : index
      %20 = vector.load %arg5[%c0_17, %c0_18] : memref<1x128xf32, #tpu.memory_space<vmem>>, vector<1x128xf32>
      %21 = vector.broadcast %20 : vector<1x128xf32> to vector<128x128xf32>
      %22 = arith.addf %19, %21 : vector<128x128xf32>
      %cst_19 = arith.constant 0.000000e+00 : f32
      %23 = vector.broadcast %cst_19 : f32 to vector<128x128xf32>
      %24 = arith.maximumf %22, %23 : vector<128x128xf32>
      %c0_20 = arith.constant 0 : index
      %c0_21 = arith.constant 0 : index
      %25 = vector.load %arg7[%c0_20, %c0_21] : memref<128x128xf32, #tpu.memory_space<vmem>>, vector<128x128xf32>
      tpu.vector_store %arg7[%c0_20, %c0_21], %24 {strides = array<i32>} : memref<128x128xf32, #tpu.memory_space<vmem>>, vector<128x128xf32>,
    } else {
    }
    return
  }
  func.func @transform_0(%arg0: i32, %arg1: i32) -> (i32, i32) {
    %c0_i32 = arith.constant 0 : i32
    return %arg0, %arg1 : i32, i32
  }
  func.func @transform_1(%arg0: i32, %arg1: i32) -> (i32, i32) {
    %c0_i32 = arith.constant 0 : i32
    %c0_i32_0 = arith.constant 0 : i32
    return %arg1, %c0_i32 : i32, i32
  }
  func.func @transform_2(%arg0: i32, %arg1: i32) -> (i32, i32) {
    %c0_i32 = arith.constant 0 : i32
    %c0_i32_0 = arith.constant 0 : i32
    return %arg0, %c0_i32 : i32, i32
  }
  func.func @transform_3(%arg0: i32, %arg1: i32) -> (i32, i32) {
    %c0_i32 = arith.constant 0 : i32
    %c0_i32_0 = arith.constant 0 : i32
    %c0_i32_1 = arith.constant 0 : i32
    return %c0_i32, %c0_i32_0 : i32, i32
  }
  func.func @transform_4(%arg0: i32, %arg1: i32) -> (i32, i32) {
    %c0_i32 = arith.constant 0 : i32
    %c0_i32_0 = arith.constant 0 : i32
    %c0_i32_1 = arith.constant 0 : i32
    return %c0_i32, %c0_i32_0 : i32, i32
  }
  func.func @transform_5(%arg0: i32, %arg1: i32) -> (i32, i32) {
    %c0_i32 = arith.constant 0 : i32
    %c0_i32_0 = arith.constant 0 : i32
    return %arg0, %c0_i32 : i32, i32
  }
}

</mosaic_0001>

<bundles_post_ra>
// kernel: tpu_custom_call.1
= control target key start
LH: loop header
LB: loop body
LE: loop exit
PB: predicated region body
PF: predicated region fallthrough
CT: control target
= control target key end

     0   :  { %10 = vsyncpa [#allocation4], 0  ;;  %s890_s0 = inlined_call_operand.hbm [shape: s8[128,128], index: 0, kind: input, shape index: {}]   ;;  %s891_s1 = inlined_call_operand.vmem [shape: bf16[128,128], index: 1, kind: input, shape index: {}]   ;;  %s892_s2 = inlined_call_operand.vmem [shape: f32[128,1], index: 2, kind: input, shape index: {}]   ;;  %s893_s3 = inlined_call_operand.vmem [shape: f32[1,128], index: 3, kind: input, shape index: {}]   ;;  %s894_s4 = inlined_call_operand.vmem [shape: bf16[128,128], index: 4, kind: input, shape index: {}]   ;;  %s895_s5 = inlined_call_operand.hbm [shape: f32[128,128], index: 5, kind: output, shape index: {}]  }
   0x1   :  { %11 = vsyncpa [#allocation5], 0  ;;  %s16_s20 = sshll.u32 %s890_s0, 4  ;;  %s726_s21 = smov [#allocation3]   ;;  %s17_s20 = int_to_ptr.hbm [resolvable:$true] %s16_s20 }
   0x2   :  { %s18_s22 = sshll.u32 %s726_s21, 4  ;;  %s727_s23 = smov 128   ;;  %s19_s22 = int_to_ptr.vmem [resolvable:$true] %s18_s22 }
   0x3   :  { %s728_s24 = smov 8  }
   0x4   :  { %24 = dma.hbm_to_vmem [thread:$0]  %s17_s20, 512, %s19_s22, [#allocation4], %s727_s23, %s727_s23, %s728_s24  }
   0x5   :  { %722 = dma.done.wait [#allocation4], 512  }
   0x6   :  { %723 = vsyncadd [#allocation4], 4294966784  ;;  %v729_v0 = vmov 0   ;;  %v640_v1 = vld [vmem:[%s891_s1 + $0x38] sm:$0xff]  ;;  %v273_v2 = vld [vmem:[%s892_s2 + $0x40] sm:$0xff]  ;;  %s556_s16 = sshll.u32 %s895_s5, 4  ;;  %s557_s16 = int_to_ptr.hbm [resolvable:$true] %s556_s16 }
   0x7   :  { %670 = vset.pattern.permute.xlu0 %v729_v0  ;;  %671 = vset.pattern.permute.xlu1 %v729_v0  ;;  %v639_v3 = vld [vmem:[%s891_s1 + $0x30] sm:$0xff]  ;;  %v265_v4 = vld [vmem:[%s892_s2] sm:$0xff]  ;;  %v638_v5 = vld [vmem:[%s891_s1 + $0x28] sm:$0xff] }
   0x8   :  { %672 = vset.pattern.permute.xlu2 %v729_v0  ;;  %339 = vperm.xlu0 %670, %v273_v2   ;;  %v274_v6 = vld [vmem:[%s892_s2 + $0x48] sm:$0xff]  ;;  %v637_v8 = vld [vmem:[%s891_s1 + $0x20] sm:$0xff]  ;;  %v636_v9 = vld [vmem:[%s891_s1 + $0x18] sm:$0xff] }
   0x9   :  { %181 = vmatpush.bf16.msra.mxu0 %v640_v1  ;;  %649 = vmatpush.bf16.msra.mxu2 %v640_v1  ;;  %v266_v7 = vld [vmem:[%s892_s2 + $0x8] sm:$0xff]  ;;  %v267_v10 = vld [vmem:[%s892_s2 + $0x10] sm:$0xff]  ;;  %v268_v11 = vld [vmem:[%s892_s2 + $0x18] sm:$0xff] }
   0xa   :  { %299 = vperm.xlu1 %671, %v265_v4   ;;  %v275_v12 = vld [vmem:[%s892_s2 + $0x50] sm:$0xff]  ;;  %v57_v14 = vld [vmem:[#allocation3] sm:$0xff]  ;;  %v634_v20 = vld [vmem:[%s891_s1 + $0x8] sm:$0xff] }
   0xb   :  { %v635_v13 = vld [vmem:[%s891_s1 + $0x10] sm:$0xff]  ;;  %349 = vperm.xlu2 %672, %v275_v12   ;;  %v61_v16 = vunpack.c.0.s8 %v57_v14  ;;  %v62_v17 = vunpack.c.1.s8 %v57_v14  ;;  %v278_v21 = vld [vmem:[%s892_s2 + $0x68] sm:$0xff]  ;;  %v269_v22 = vld [vmem:[%s892_s2 + $0x20] sm:$0xff]  ;;  %v63_v33 = vunpack.c.2.s8 %v57_v14  ;;  %v64_v34 = vunpack.c.3.s8 %v57_v14 }
   0xc   :  { %v59_v15 = vld [vmem:[#allocation3 + $0x10] sm:$0xff]  ;;  %v633_v27 = vld [vmem:[%s891_s1] sm:$0xff]  ;;  %v280_v31 = vld [vmem:[%s892_s2 + $0x78] sm:$0xff] }
   0xd   :  { %182 = vmatpush.bf16.msra.mxu0 %v639_v3  ;;  %650 = vmatpush.bf16.msra.mxu2 %v639_v3  ;;  %v69_v18 = vunpack.c.0.s8 %v59_v15  ;;  %v70_v19 = vunpack.c.1.s8 %v59_v15  ;;  %v77_v23 = vcvt.s32.f32 %v61_v16  ;;  %v78_v24 = vcvt.s32.f32 %v62_v17  ;;  %v279_v30 = vld [vmem:[%s892_s2 + $0x70] sm:$0xff]  ;;  %v276_v32 = vld [vmem:[%s892_s2 + $0x58] sm:$0xff]  ;;  %v277_v38 = vld [vmem:[%s892_s2 + $0x60] sm:$0xff] }
   0xe   :  { %v71_v35 = vunpack.c.2.s8 %v59_v15  ;;  %v72_v36 = vunpack.c.3.s8 %v59_v15  ;;  %v272_v37 = vld [vmem:[%s892_s2 + $0x38] sm:$0xff]  ;;  %v79_v39 = vcvt.s32.f32 %v63_v33  ;;  %v80_v40 = vcvt.s32.f32 %v64_v34  ;;  %v270_v45 = vld [vmem:[%s892_s2 + $0x28] sm:$0xff]  ;;  %v271_v52 = vld [vmem:[%s892_s2 + $0x30] sm:$0xff] }
   0xf   :  { %v85_v25 = vcvt.s32.f32 %v69_v18  ;;  %v86_v26 = vcvt.s32.f32 %v70_v19  ;;  %v93_v28 = vpack.c.bf16 %v78_v24, %v77_v23  ;;  %v58_v46 = vld [vmem:[#allocation3 + $0x8] sm:$0xff]  ;;  %v60_v47 = vld [vmem:[#allocation3 + $0x18] sm:$0xff]  ;;  %v641_v12 = vld [vmem:[%s894_s4] sm:$0xff] }
  0x10   :  { %344 = vperm.xlu0 %670, %v274_v6   ;;  %v87_v41 = vcvt.s32.f32 %v71_v35  ;;  %v88_v42 = vcvt.s32.f32 %v72_v36  ;;  %v94_v43 = vpack.c.bf16 %v80_v40, %v79_v39  ;;  %v65_v48 = vunpack.c.0.s8 %v58_v46  ;;  %v647_v6 = vld [vmem:[%s894_s4 + $0x30] sm:$0xff] }
  0x11   :  { %183 = vmatpush.bf16.msra.mxu0 %v638_v5  ;;  %651 = vmatpush.bf16.msra.mxu2 %v638_v5  ;;  %v97_v29 = vpack.c.bf16 %v86_v26, %v85_v25  ;;  %v66_v49 = vunpack.c.1.s8 %v58_v46  ;;  %v73_v50 = vunpack.c.0.s8 %v60_v47  ;;  %v74_v51 = vunpack.c.1.s8 %v60_v47  ;;  %v648_v5 = vld [vmem:[%s894_s4 + $0x38] sm:$0xff] }
  0x12   :  { %304 = vperm.xlu1 %671, %v266_v7   ;;  %v98_v44 = vpack.c.bf16 %v88_v42, %v87_v41  ;;  %v81_v53 = vcvt.s32.f32 %v65_v48  ;;  %v67_v59 = vunpack.c.2.s8 %v58_v46  ;;  %v68_v60 = vunpack.c.3.s8 %v58_v46  ;;  %469 = vmatpush.bf16.msra.mxu1 %v648_v5  ;;  %v646_v7 = vld [vmem:[%s894_s4 + $0x28] sm:$0xff] }
  0x13   :  { %354 = vperm.xlu2 %672, %v276_v32   ;;  %v82_v54 = vcvt.s32.f32 %v66_v49  ;;  %v89_v55 = vcvt.s32.f32 %v73_v50  ;;  %v90_v56 = vcvt.s32.f32 %v74_v51  ;;  %v75_v61 = vunpack.c.2.s8 %v60_v47  ;;  %657 = vmatpush.bf16.msra.mxu3 %v648_v5  ;;  %v866_v5 = vld [vmem:[%s893_s3] ss:$0 sm:$0xff]  ;;  %s730_s3 = smov [#allocation6]  }
  0x14   :  { %v76_v62 = vunpack.c.3.s8 %v60_v47  ;;  %v83_v63 = vcvt.s32.f32 %v67_v59  ;;  %v84_v0 = vcvt.s32.f32 %v68_v60  ;;  %s554_s14 = sshll.u32 %s730_s3, 4  ;;  %s555_s14 = int_to_ptr.vmem [resolvable:$true] %s554_s14 }
  0x15   :  { %184 = vmatpush.bf16.msra.mxu0 %v637_v8  ;;  %652 = vmatpush.bf16.msra.mxu2 %v637_v8  ;;  %v95_v57 = vpack.c.bf16 %v82_v54, %v81_v53  ;;  %v99_v58 = vpack.c.bf16 %v90_v56, %v89_v55  ;;  %v91_v1 = vcvt.s32.f32 %v75_v61  ;;  %v645_v8 = vld [vmem:[%s894_s4 + $0x20] sm:$0xff] }
  0x16   :  { %v92_v2 = vcvt.s32.f32 %v76_v62  ;;  %v96_v3 = vpack.c.bf16 %v84_v0, %v83_v63  ;;  %470 = vmatpush.bf16.msra.mxu1 %v647_v6 }
  0x17   :  { %658 = vmatpush.bf16.msra.mxu3 %v647_v6 }
  0x18   :  { %309 = vperm.xlu0 %670, %v267_v10   ;;  %v100_v4 = vpack.c.bf16 %v92_v2, %v91_v1  ;;  %v643_v10 = vld [vmem:[%s894_s4 + $0x10] sm:$0xff] }
  0x19   :  { %185 = vmatpush.bf16.msra.mxu0 %v636_v9  ;;  %653 = vmatpush.bf16.msra.mxu2 %v636_v9  ;;  %v644_v9 = vld [vmem:[%s894_s4 + $0x18] sm:$0xff] }
  0x1a   :  { %314 = vperm.xlu1 %671, %v268_v11   ;;  %471 = vmatpush.bf16.msra.mxu1 %v646_v7  ;;  %v642_v11 = vld [vmem:[%s894_s4 + $0x8] sm:$0xff] }
  0x1b   :  { %359 = vperm.xlu2 %672, %v277_v38   ;;  %659 = vmatpush.bf16.msra.mxu3 %v646_v7 }
  0x1d   :  { %186 = vmatpush.bf16.msra.mxu0 %v635_v13  ;;  %654 = vmatpush.bf16.msra.mxu2 %v635_v13 }
  0x1e   :  { %472 = vmatpush.bf16.msra.mxu1 %v645_v8 }
  0x1f   :  { %660 = vmatpush.bf16.msra.mxu3 %v645_v8 }
  0x20   :  { %364 = vperm.xlu0 %670, %v278_v21  }
  0x21   :  { %187 = vmatpush.bf16.msra.mxu0 %v634_v20  ;;  %655 = vmatpush.bf16.msra.mxu2 %v634_v20 }
  0x22   :  { %319 = vperm.xlu1 %671, %v269_v22   ;;  %473 = vmatpush.bf16.msra.mxu1 %v644_v9 }
  0x23   :  { %324 = vperm.xlu2 %672, %v270_v45   ;;  %661 = vmatpush.bf16.msra.mxu3 %v644_v9 }
  0x25   :  { %188 = vmatpush.bf16.msra.mxu0 %v633_v27  ;;  %656 = vmatpush.bf16.msra.mxu2 %v633_v27 }
  0x26   :  { %474 = vmatpush.bf16.msra.mxu1 %v643_v10 }
  0x27   :  { %662 = vmatpush.bf16.msra.mxu3 %v643_v10 }
  0x28   :  { %189 = vmatmul.bf16.vlgmr.msra.gmra.mxu0 %v93_v28  ;;  %209 = vmatmul.bf16.vlgmr.msra.gmra.mxu2 %v97_v29 }
  0x29   :  { %369 = vperm.xlu0 %670, %v279_v30  }
  0x2a   :  { %374 = vperm.xlu1 %671, %v280_v31   ;;  %475 = vmatpush.bf16.msra.mxu1 %v642_v11 }
  0x2b   :  { %329 = vperm.xlu2 %672, %v271_v52   ;;  %663 = vmatpush.bf16.msra.mxu3 %v642_v11 }
  0x2e   :  { %476 = vmatpush.bf16.msra.mxu1 %v641_v12 }
  0x2f   :  { %664 = vmatpush.bf16.msra.mxu3 %v641_v12 }
  0x31   :  { %334 = vperm.xlu0 %670, %v272_v37  }
  0x38   :  { %194 = vmatmul.bf16.gmra.mxu0 %v94_v43  ;;  %214 = vmatmul.bf16.gmra.mxu2 %v98_v44 }
  0x48   :  { %199 = vmatmul.bf16.gmra.mxu0 %v95_v57  ;;  %219 = vmatmul.bf16.gmra.mxu2 %v99_v58 }
  0x58   :  { %204 = vmatmul.bf16.gmra.mxu0 %v96_v3  ;;  %224 = vmatmul.bf16.gmra.mxu2 %v100_v4 }
  0x65   :  { %v350_v20 = vpop.permute.xlu2 %349 }
  0x6d   :  { %v355_v29 = vpop.permute.xlu2 %354 }
  0x75   :  { %v360_v37 = vpop.permute.xlu2 %359 }
  0x7a   :  { %v340_v15 = vpop.permute.xlu0 %339 }
  0x7c   :  { %v300_v13 = vpop.permute.xlu1 %299 }
  0x7d   :  { %v325_v45 = vpop.permute.xlu2 %324 }
  0x82   :  { %v345_v23 = vpop.permute.xlu0 %344 }
  0x84   :  { %v305_v18 = vpop.permute.xlu1 %304 }
  0x85   :  { %v330_v58 = vpop.permute.xlu2 %329 }
  0x8a   :  { %v310_v31 = vpop.permute.xlu0 %309 }
  0x8c   :  { %v315_v32 = vpop.permute.xlu1 %314 }
  0x92   :  { %v365_v43 = vpop.permute.xlu0 %364 }
  0x94   :  { %v320_v46 = vpop.permute.xlu1 %319 }
  0x9b   :  { %v370_v51 = vpop.permute.xlu0 %369 }
  0x9c   :  { %v375_v0 = vpop.permute.xlu1 %374 }
  0xa3   :  { %v335_v59 = vpop.permute.xlu0 %334 }
  0xa5   :  { %v190_v14 = vpop.f32.mrf.mxu0 }
  0xa6   :  { %v377_v17 = vmul.f32 %v300_v13, %v190_v14 }
  0xab   :  { %v210_v16 = vpop.f32.mrf.mxu2 }
  0xac   :  { %v385_v25 = vmul.f32 %v340_v15, %v210_v16 }
  0xad   :  { %v192_v19 = vpop.f32.mrf.mxu0 }
  0xae   :  { %v378_v21 = vmul.f32 %v305_v18, %v192_v19 }
  0xb0   :  { %v393_v22 = vpack.c.bf16 %v378_v21, %v377_v17 }
  0xb2   :  { %477 = vmatmul.bf16.vlgmr.msra.gmra.mxu1 %v393_v22 }
  0xb3   :  { %v212_v24 = vpop.f32.mrf.mxu2 }
  0xb4   :  { %v386_v26 = vmul.f32 %v345_v23, %v212_v24 }
  0xb5   :  { %v195_v27 = vpop.f32.mrf.mxu0 }
  0xb6   :  { %v397_v28 = vpack.c.bf16 %v386_v26, %v385_v25  ;;  %v379_v34 = vmul.f32 %v310_v31, %v195_v27 }
  0xb8   :  { %497 = vmatmul.bf16.vlgmr.msra.gmra.mxu3 %v397_v28 }
  0xbb   :  { %v215_v30 = vpop.f32.mrf.mxu2 }
  0xbc   :  { %v387_v39 = vmul.f32 %v350_v20, %v215_v30 }
  0xbd   :  { %v197_v33 = vpop.f32.mrf.mxu0 }
  0xbe   :  { %v380_v35 = vmul.f32 %v315_v32, %v197_v33 }
  0xc0   :  { %v394_v36 = vpack.c.bf16 %v380_v35, %v379_v34 }
  0xc2   :  { %482 = vmatmul.bf16.gmra.mxu1 %v394_v36 }
  0xc3   :  { %v217_v38 = vpop.f32.mrf.mxu2 }
  0xc4   :  { %v388_v40 = vmul.f32 %v355_v29, %v217_v38 }
  0xc5   :  { %v200_v41 = vpop.f32.mrf.mxu0 }
  0xc6   :  { %v398_v42 = vpack.c.bf16 %v388_v40, %v387_v39  ;;  %v381_v48 = vmul.f32 %v320_v46, %v200_v41 }
  0xc8   :  { %502 = vmatmul.bf16.gmra.mxu3 %v398_v42 }
  0xcb   :  { %v220_v44 = vpop.f32.mrf.mxu2 }
  0xcc   :  { %v389_v53 = vmul.f32 %v360_v37, %v220_v44 }
  0xcd   :  { %v202_v47 = vpop.f32.mrf.mxu0 }
  0xce   :  { %v382_v49 = vmul.f32 %v325_v45, %v202_v47 }
  0xd0   :  { %v395_v50 = vpack.c.bf16 %v382_v49, %v381_v48 }
  0xd2   :  { %487 = vmatmul.bf16.gmra.mxu1 %v395_v50 }
  0xd3   :  { %v222_v52 = vpop.f32.mrf.mxu2 }
  0xd4   :  { %v390_v54 = vmul.f32 %v365_v43, %v222_v52 }
  0xd5   :  { %v205_v55 = vpop.f32.mrf.mxu0 }
  0xd6   :  { %v399_v56 = vpack.c.bf16 %v390_v54, %v389_v53  ;;  %v383_v61 = vmul.f32 %v330_v58, %v205_v55 }
  0xd8   :  { %507 = vmatmul.bf16.gmra.mxu3 %v399_v56 }
  0xdb   :  { %v225_v57 = vpop.f32.mrf.mxu2 }
  0xdc   :  { %v391_v2 = vmul.f32 %v370_v51, %v225_v57 }
  0xdd   :  { %v207_v60 = vpop.f32.mrf.mxu0 }
  0xde   :  { %v384_v62 = vmul.f32 %v335_v59, %v207_v60 }
  0xe0   :  { %v396_v63 = vpack.c.bf16 %v384_v62, %v383_v61 }
  0xe2   :  { %492 = vmatmul.bf16.gmra.mxu1 %v396_v63 }
  0xe3   :  { %v227_v1 = vpop.f32.mrf.mxu2 }
  0xe4   :  { %v392_v3 = vmul.f32 %v375_v0, %v227_v1 }
  0xe6   :  { %v400_v4 = vpack.c.bf16 %v392_v3, %v391_v2 }
  0xe8   :  { %512 = vmatmul.bf16.gmra.mxu3 %v400_v4 }
 0x12f   :  { %v478_v6 = vpop.f32.mrf.mxu1 }
 0x130   :  { %v479_v7 = vadd.f32 %v866_v5, %v478_v6 }
 0x132   :  { %v518_v8 = vmax.f32 %v479_v7, 0.0 }
 0x134   :  { %534 = vst [vmem:[#allocation6] sm:$0xff] %v518_v8 }
 0x137   :  { %v480_v9 = vpop.f32.mrf.mxu1 }
 0x138   :  { %v481_v10 = vadd.f32 %v866_v5, %v480_v9 }
 0x13a   :  { %v519_v11 = vmax.f32 %v481_v10, 0.0 }
 0x13b   :  { %v498_v12 = vpop.f32.mrf.mxu3 }
 0x13c   :  { %535 = vst [vmem:[#allocation6 + $0x8] sm:$0xff] %v519_v11  ;;  %v499_v13 = vadd.f32 %v866_v5, %v498_v12 }
 0x13e   :  { %v526_v14 = vmax.f32 %v499_v13, 0.0 }
 0x13f   :  { %v483_v15 = vpop.f32.mrf.mxu1 }
 0x140   :  { %542 = vst [vmem:[#allocation6 + $0x40] sm:$0xff] %v526_v14  ;;  %v484_v16 = vadd.f32 %v866_v5, %v483_v15 }
 0x142   :  { %v520_v17 = vmax.f32 %v484_v16, 0.0 }
 0x143   :  { %v500_v18 = vpop.f32.mrf.mxu3 }
 0x144   :  { %536 = vst [vmem:[#allocation6 + $0x10] sm:$0xff] %v520_v17  ;;  %v501_v19 = vadd.f32 %v866_v5, %v500_v18 }
 0x146   :  { %v527_v20 = vmax.f32 %v501_v19, 0.0 }
 0x147   :  { %v485_v21 = vpop.f32.mrf.mxu1 }
 0x148   :  { %543 = vst [vmem:[#allocation6 + $0x48] sm:$0xff] %v527_v20  ;;  %v486_v22 = vadd.f32 %v866_v5, %v485_v21 }
 0x14a   :  { %v521_v23 = vmax.f32 %v486_v22, 0.0 }
 0x14b   :  { %v503_v24 = vpop.f32.mrf.mxu3 }
 0x14c   :  { %537 = vst [vmem:[#allocation6 + $0x18] sm:$0xff] %v521_v23  ;;  %v504_v25 = vadd.f32 %v866_v5, %v503_v24 }
 0x14e   :  { %v528_v26 = vmax.f32 %v504_v25, 0.0 }
 0x14f   :  { %v488_v27 = vpop.f32.mrf.mxu1 }
 0x150   :  { %544 = vst [vmem:[#allocation6 + $0x50] sm:$0xff] %v528_v26  ;;  %v489_v28 = vadd.f32 %v866_v5, %v488_v27 }
 0x152   :  { %v522_v29 = vmax.f32 %v489_v28, 0.0 }
 0x153   :  { %v505_v30 = vpop.f32.mrf.mxu3 }
 0x154   :  { %538 = vst [vmem:[#allocation6 + $0x20] sm:$0xff] %v522_v29  ;;  %v506_v31 = vadd.f32 %v866_v5, %v505_v30 }
 0x156   :  { %v529_v32 = vmax.f32 %v506_v31, 0.0 }
 0x157   :  { %v490_v33 = vpop.f32.mrf.mxu1 }
 0x158   :  { %545 = vst [vmem:[#allocation6 + $0x58] sm:$0xff] %v529_v32  ;;  %v491_v34 = vadd.f32 %v866_v5, %v490_v33 }
 0x15a   :  { %v523_v35 = vmax.f32 %v491_v34, 0.0 }
 0x15b   :  { %v508_v36 = vpop.f32.mrf.mxu3 }
 0x15c   :  { %539 = vst [vmem:[#allocation6 + $0x28] sm:$0xff] %v523_v35  ;;  %v509_v37 = vadd.f32 %v866_v5, %v508_v36 }
 0x15e   :  { %v530_v38 = vmax.f32 %v509_v37, 0.0 }
 0x15f   :  { %v493_v39 = vpop.f32.mrf.mxu1 }
 0x160   :  { %546 = vst [vmem:[#allocation6 + $0x60] sm:$0xff] %v530_v38  ;;  %v494_v40 = vadd.f32 %v866_v5, %v493_v39 }
 0x162   :  { %v524_v41 = vmax.f32 %v494_v40, 0.0 }
 0x163   :  { %v510_v42 = vpop.f32.mrf.mxu3 }
 0x164   :  { %540 = vst [vmem:[#allocation6 + $0x30] sm:$0xff] %v524_v41  ;;  %v511_v43 = vadd.f32 %v866_v5, %v510_v42 }
 0x166   :  { %v531_v44 = vmax.f32 %v511_v43, 0.0 }
 0x167   :  { %v495_v45 = vpop.f32.mrf.mxu1 }
 0x168   :  { %547 = vst [vmem:[#allocation6 + $0x68] sm:$0xff] %v531_v44  ;;  %v496_v46 = vadd.f32 %v866_v5, %v495_v45 }
 0x16a   :  { %v525_v47 = vmax.f32 %v496_v46, 0.0 }
 0x16b   :  { %v513_v48 = vpop.f32.mrf.mxu3 }
 0x16c   :  { %541 = vst [vmem:[#allocation6 + $0x38] sm:$0xff] %v525_v47  ;;  %v514_v49 = vadd.f32 %v866_v5, %v513_v48 }
 0x16e   :  { %v532_v50 = vmax.f32 %v514_v49, 0.0 }
 0x170   :  { %548 = vst [vmem:[#allocation6 + $0x70] sm:$0xff] %v532_v50 }
 0x173   :  { %v515_v51 = vpop.f32.mrf.mxu3 }
 0x174   :  { %v516_v52 = vadd.f32 %v866_v5, %v515_v51 }
 0x176   :  { %v533_v53 = vmax.f32 %v516_v52, 0.0 }
 0x178   :  { %549 = vst [vmem:[#allocation6 + $0x78] sm:$0xff] %v533_v53 }
 0x179   :  { %562 = dma.vmem_to_hbm [thread:$0]  %s555_s14, 2048, %s557_s16, [#allocation5], %s727_s23, %s727_s23, %s728_s24  }
 0x17a   :  { %724 = dma.done.wait [#allocation5], 2048  }
 0x17b   :  { %725 = vsyncadd [#allocation5], 4294965248 }
 0x17c   :  { %567 = vsyncpa [#allocation4], 1 }
 0x17d   :  { %568 = vsyncpa [#allocation5], 1 }

</bundles_post_ra>
